<compile_context>
chip_gen: v5e
topology: v5e:2x2
jax: 0.10.0
libtpu: 0.0.40
codegen_flags: <defaults>
</compile_context>

<pallas_src>
import jax
import jax.numpy as jnp
from jax.experimental import pallas as pl
from jax.experimental.pallas import tpu as pltpu

_SOFTPLUS_THRESHOLD = 20.0  # matches torch.nn.functional.softplus default
_CLAMP_MIN = 0.0001
_CLAMP_MAX = 10000.0
_LANE = 128


def _dispact_kernel(x_ref, o_ref):
    # f32 internal compute: free while HBM-bound, better softplus accuracy for
    # bf16/f16 inputs, identical results across chip generations.
    x = x_ref[...].astype(jnp.float32)
    # PyTorch softplus: x > threshold -> x, else log1p(exp(x)).  No minimum()
    # overflow guard: exp() may produce inf on the x > threshold lanes, but the
    # where() discards it (forward pass only).
    sp = jnp.where(x > _SOFTPLUS_THRESHOLD, x, jnp.log1p(jnp.exp(x)))
    o_ref[...] = jnp.clip(sp, _CLAMP_MIN, _CLAMP_MAX).astype(o_ref.dtype)


def _chip_params():
    """Returns (target_block_bytes, vmem_limit_bytes, num_tensorcores)."""
    kind = ""
    try:
        kind = jax.devices()[0].device_kind.lower()
    except Exception:
        pass
    if "v7" in kind:
        # v7x: 3.2 TB/s HBM wants bigger tiles; 2 TCs per chip; 64 MiB VMEM.
        # 8 MiB x 2 buffers x (in + out) = 32 MiB -> ask for 40 MiB scoped.
        return 8 * 1024 * 1024, 40 * 1024 * 1024, 2
    # v5e / v6e: single TensorCore.  4 MiB tiles double-buffered in+out use
    # 16 MiB; set the scoped limit explicitly (v5e default is only 16 MiB).
    return 4 * 1024 * 1024, 32 * 1024 * 1024, 1


def _sublane_pack(itemsize):
    # f32 -> 8 rows/vreg, bf16/f16 -> 16, int8/fp8 -> 32.
    return max(8, 32 // max(1, itemsize))


def _choose_block_rows(rows, itemsize, target_bytes, num_cores):
    """Block rows for the [rows, 128] slab: dtype-aware byte target, rounded to
    the sublane pack; split only when needed (or for v7x dual-TC sharding)."""
    pack = _sublane_pack(itemsize)
    cap = max(pack, (target_bytes // (_LANE * itemsize)) // pack * pack)
    if num_cores > 1 and rows * _LANE * itemsize >= 2 * target_bytes:
        # Large array on a dual-TC chip: keep >= 2 blocks per TensorCore so
        # the "parallel" grid axis can shard across cores.
        per_core = -(-rows // (2 * num_cores))
        per_core = -(-per_core // pack) * pack
        cap = min(cap, max(pack, per_core))
    if rows <= cap:
        return rows  # single block covering the full extent (always legal)
    return cap       # multiple of the sublane pack; last grid block is partial


def _choose_block_elems(n, itemsize, target_bytes):
    """Block length for the flat 1-D (unaligned) path."""
    granule = _LANE * _sublane_pack(itemsize)
    cap = max(granule, (target_bytes // (granule * itemsize)) * granule)
    if n <= cap:
        return n     # single full-extent block
    return cap       # multiple of 128; Pallas masks the ragged last block


def _run(slab, block_shape, grid, index_map, vmem_limit_bytes):
    itemsize = jnp.dtype(slab.dtype).itemsize
    n_elems = slab.size
    cost = pl.CostEstimate(
        flops=4 * n_elems,
        transcendentals=2 * n_elems,           # exp + log1p
        bytes_accessed=2 * n_elems * itemsize,  # read + write
    )
    return pl.pallas_call(
        _dispact_kernel,
        out_shape=jax.ShapeDtypeStruct(slab.shape, slab.dtype),
        grid_spec=pltpu.PrefetchScalarGridSpec(
            num_scalar_prefetch=0,
            grid=grid,
            in_specs=[pl.BlockSpec(block_shape, index_map)],
            out_specs=pl.BlockSpec(block_shape, index_map),
        ),
        compiler_params=pltpu.CompilerParams(
            # TODO(synk): verify via xprof that "parallel" shards the 1-D grid
            # across both v7x TensorCores; switch to CORE_PARALLEL if not.
            dimension_semantics=("parallel",),
            vmem_limit_bytes=vmem_limit_bytes,
        ),
        cost_estimate=cost,
    )(slab)


def disp_act(x):
    """Elementwise clamp(softplus(x), 1e-4, 1e4) on TPU via Pallas."""
    orig_shape = x.shape
    n = x.size
    if n == 0:
        return x

    target_bytes, vmem_limit, num_cores = _chip_params()
    itemsize = jnp.dtype(x.dtype).itemsize
    flat = x.reshape(-1)

    if n % _LANE == 0:
        # Fast path: metadata-only reshape to a lane-dense [rows, 128] slab.
        rows = n // _LANE
        slab = flat.reshape(rows, _LANE)
        block_rows = _choose_block_rows(rows, itemsize, target_bytes, num_cores)
        out = _run(
            slab,
            block_shape=(block_rows, _LANE),
            grid=(pl.cdiv(rows, block_rows),),
            index_map=lambda i: (i, 0),
            vmem_limit_bytes=vmem_limit,
        )
        return out.reshape(orig_shape)

    # Unaligned path: flat 1-D blocks with a masked partial tail — no extra
    # pad/slice HBM copies.
    block_elems = _choose_block_elems(n, itemsize, target_bytes)
    out = _run(
        flat,
        block_shape=(block_elems,),
        grid=(pl.cdiv(n, block_elems),),
        index_map=lambda i: (i,),
        vmem_limit_bytes=vmem_limit,
    )
    return out.reshape(orig_shape)


def _ref(x):
    xf = x.astype(jnp.float32)
    sp = jnp.where(
        xf > _SOFTPLUS_THRESHOLD,
        xf,
        jnp.log1p(jnp.exp(jnp.minimum(xf, _SOFTPLUS_THRESHOLD))),
    )
    return jnp.clip(sp, _CLAMP_MIN, _CLAMP_MAX).astype(x.dtype)


if __name__ == "__main__":
    key = jax.random.PRNGKey(0)

    # NCHW input like a PyTorch conv feature map (aligned fast path).
    x = jax.random.normal(key, (2, 4, 16, 16), dtype=jnp.float32) * 5.0
    y = disp_act(x)
    jax.block_until_ready(y)
    assert y.shape == x.shape and y.dtype == x.dtype
    assert jnp.allclose(y, _ref(x), atol=1e-6, rtol=1e-6)

    # Unaligned shape exercises the flat 1-D masked-tail path.
    x2 = jax.random.normal(jax.random.PRNGKey(1), (3, 5, 7), dtype=jnp.float32) * 5.0
    y2 = disp_act(x2)
    jax.block_until_ready(y2)
    assert y2.shape == x2.shape and y2.dtype == x2.dtype
    assert jnp.allclose(y2, _ref(x2), atol=1e-6, rtol=1e-6)

    # bf16 input checks the dtype-aware block sizing / sublane pack path.
    x3 = (jax.random.normal(jax.random.PRNGKey(2), (4, 8, 32), dtype=jnp.float32)
          * 5.0).astype(jnp.bfloat16)
    y3 = disp_act(x3)
    jax.block_until_ready(y3)
    assert y3.shape == x3.shape and y3.dtype == x3.dtype
    assert jnp.allclose(y3.astype(jnp.float32), _ref(x3).astype(jnp.float32),
                        atol=2e-2, rtol=2e-2)

    print("KERNEL_OK")
</pallas_src>

<mosaic_0001>
module attributes {stable_mosaic.version = 11 : i64} {
  func.func @_dispact_kernel(%arg0: i32, %arg1: memref<16x128xf32, #tpu.memory_space<vmem>>, %arg2: memref<16x128xf32, #tpu.memory_space<vmem>>) attributes {dimension_semantics = [#tpu.dimension_semantics<parallel>], iteration_bounds = array<i64: 1>, scalar_prefetch = 0 : i64, scratch_operands = 0 : i64, tpu.core_type = #tpu.core_type<tc>, window_params = [{transform_indices = @transform_0, window_bounds = array<i64: 16, 128>}, {transform_indices = @transform_1, window_bounds = array<i64: 16, 128>}]} {
    %c0 = arith.constant 0 : index
    %c0_0 = arith.constant 0 : index
    %0 = vector.load %arg1[%c0, %c0_0] : memref<16x128xf32, #tpu.memory_space<vmem>>, vector<16x128xf32>
    %cst = arith.constant 2.000000e+01 : f32
    %1 = vector.broadcast %cst : f32 to vector<16x128xf32>
    %2 = arith.cmpf ogt, %0, %1 : vector<16x128xf32>
    %3 = math.exp %0 : vector<16x128xf32>
    %4 = math.log1p %3 : vector<16x128xf32>
    %5 = arith.select %2, %0, %4 : vector<16x128xi1>, vector<16x128xf32>
    %cst_1 = arith.constant 9.99999974E-5 : f32
    %cst_2 = arith.constant 1.000000e+04 : f32
    %6 = vector.broadcast %cst_1 : f32 to vector<16x128xf32>
    %7 = arith.maximumf %6, %5 : vector<16x128xf32>
    %8 = vector.broadcast %cst_2 : f32 to vector<16x128xf32>
    %9 = arith.minimumf %8, %7 : vector<16x128xf32>
    %c0_3 = arith.constant 0 : index
    %c0_4 = arith.constant 0 : index
    %10 = vector.load %arg2[%c0_3, %c0_4] : memref<16x128xf32, #tpu.memory_space<vmem>>, vector<16x128xf32>
    tpu.vector_store %arg2[%c0_3, %c0_4], %9 {strides = array<i32>} : memref<16x128xf32, #tpu.memory_space<vmem>>, vector<16x128xf32>,
    return
  }
  func.func @transform_0(%arg0: i32) -> (i32, i32) {
    %c0_i32 = arith.constant 0 : i32
    %c0_i32_0 = arith.constant 0 : i32
    return %arg0, %c0_i32 : i32, i32
  }
  func.func @transform_1(%arg0: i32) -> (i32, i32) {
    %c0_i32 = arith.constant 0 : i32
    %c0_i32_0 = arith.constant 0 : i32
    return %arg0, %c0_i32 : i32, i32
  }
}

</mosaic_0001>

<bundles_post_ra>
// kernel: tpu_custom_call.1
= control target key start
LH: loop header
LB: loop body
LE: loop exit
PB: predicated region body
PF: predicated region fallthrough
CT: control target
= control target key end

     0   :  { %6 = vsyncpa [#allocation3], 0  ;;  %s168_s0 = inlined_call_operand.hbm [shape: f32[16,128], index: 0, kind: input, shape index: {}]   ;;  %s169_s1 = inlined_call_operand.hbm [shape: f32[16,128], index: 1, kind: output, shape index: {}]  }
   0x1   :  { %7 = vsyncpa [#allocation4], 0  ;;  %s12_s8 = sshll.u32 %s168_s0, 4  ;;  %s142_s9 = smov [#allocation2]   ;;  %s13_s8 = int_to_ptr.hbm [resolvable:$true] %s12_s8 }
   0x2   :  { %s14_s10 = sshll.u32 %s142_s9, 4  ;;  %s143_s11 = smov 128   ;;  %s15_s10 = int_to_ptr.vmem [resolvable:$true] %s14_s10 }
   0x3   :  { %s144_s12 = smov 8  }
   0x4   :  { %20 = dma.hbm_to_vmem [thread:$0]  %s13_s8, 256, %s15_s10, [#allocation3], %s143_s11, %s143_s11, %s144_s12  }
   0x5   :  { %138 = dma.done.wait [#allocation3], 256  }
   0x6   :  { %139 = vsyncadd [#allocation3], 4294967040  ;;  %v25_v0 = vld [vmem:[#allocation2] sm:$0xff]  ;;  %v26_v1 = vld [vmem:[#allocation2 + $0x8] sm:$0xff]  ;;  %s145_s0 = smov [#allocation5]   ;;  %s65_s16 = sshll.u32 %s169_s1, 4  ;;  %s66_s16 = int_to_ptr.hbm [resolvable:$true] %s65_s16 }
   0x7   :  { %v29_v2 = vmul.f32 1.442695, %v25_v0  ;;  %v31_v3 = vmul.f32 1.442695, %v26_v1  ;;  %vm27_vm1 = vcmp.gt.f32.partialorder %v25_v0, 20.0  ;;  %vm28_vm3 = vcmp.gt.f32.partialorder %v26_v1, 20.0 }
   0x8   :  { %s63_s13 = sshll.u32 %s145_s0, 4  ;;  %s64_s13 = int_to_ptr.vmem [resolvable:$true] %s63_s13 }
   0x9   :  { %82 = vpow2.f32 %v29_v2 }
   0xa   :  { %84 = vpow2.f32 %v31_v3 }
   0xf   :  { %v83_v4 = vpop.eup %82 }
  0x10   :  { %v85_v5 = vpop.eup %84  ;;  %v33_v6 = vadd.f32 1.0, %v83_v4  ;;  %v36_v7 = vmul.f32 -0.5, %v83_v4  ;;  %v39_v11 = vand.u32 2147483647, %v83_v4 }
  0x11   :  { %v42_v8 = vadd.f32 1.0, %v85_v5  ;;  %v45_v9 = vmul.f32 -0.5, %v85_v5  ;;  %v48_v13 = vand.u32 2147483647, %v85_v5 }
  0x12   :  { %86 = vlog2.f32 %v33_v6  ;;  %v37_v10 = vadd.f32 1.0, %v36_v7  ;;  %vm40_vm0 = vcmp.lt.f32.partialorder %v39_v11, 0.0004427343 }
  0x13   :  { %88 = vlog2.f32 %v42_v8  ;;  %v46_v12 = vadd.f32 1.0, %v45_v9  ;;  %vm49_vm2 = vcmp.lt.f32.partialorder %v48_v13, 0.0004427343 }
  0x14   :  { %v38_v14 = vmul.f32 %v83_v4, %v37_v10 }
  0x15   :  { %v47_v16 = vmul.f32 %v85_v5, %v46_v12 }
  0x18   :  { %v87_v15 = vpop.eup %86 }
  0x19   :  { %v89_v17 = vpop.eup %88  ;;  %v35_v18 = vmul.f32 0.6931472, %v87_v15 }
  0x1a   :  { %v44_v19 = vmul.f32 0.6931472, %v89_v17 }
  0x1b   :  { %v41_v20 = vsel %vm40_vm0, %v38_v14, %v35_v18 }
  0x1c   :  { %v51_v21 = vsel %vm27_vm1, %v25_v0, %v41_v20  ;;  %v50_v22 = vsel %vm49_vm2, %v47_v16, %v44_v19 }
  0x1d   :  { %v53_v23 = vmax.f32 %v51_v21, 0.0001  ;;  %v52_v24 = vsel %vm28_vm3, %v26_v1, %v50_v22 }
  0x1e   :  { %v54_v25 = vmax.f32 %v52_v24, 0.0001 }
  0x1f   :  { %v55_v26 = vmin.f32 %v53_v23, 10000.0 }
  0x20   :  { %v56_v27 = vmin.f32 %v54_v25, 10000.0 }
  0x21   :  { %57 = vst [vmem:[#allocation5] sm:$0xff] %v55_v26 }
  0x22   :  { %58 = vst [vmem:[#allocation5 + $0x8] sm:$0xff] %v56_v27 }
  0x23   :  { %71 = dma.vmem_to_hbm [thread:$0]  %s64_s13, 256, %s66_s16, [#allocation4], %s143_s11, %s143_s11, %s144_s12  }
  0x24   :  { %140 = dma.done.wait [#allocation4], 256  }
  0x25   :  { %141 = vsyncadd [#allocation4], 4294967040 }
  0x26   :  { %76 = vsyncpa [#allocation3], 1 }
  0x27   :  { %77 = vsyncpa [#allocation4], 1 }

</bundles_post_ra>
